<compile_context>
chip_gen: v7x
topology: tpu7x:2x2x1
jax: 0.10.0
libtpu: 0.0.40
codegen_flags: <defaults>
</compile_context>

<pallas_src>
import jax
import jax.numpy as jnp
from jax.experimental import pallas as pl
from jax.experimental.pallas import tpu as pltpu


def _round_up(x, m):
    return ((x + m - 1) // m) * m


def gate_multirules_kernel(x_ref,
                           w1_ref, b1_ref,
                           w2_ref, b2_ref,
                           w3_ref, b3_ref,
                           wd_ref, bd_ref,
                           o_ref):
    # x_ref : [Tb, D]   native row-major batch block (compute dtype)
    # w*    : [out, in] (compute dtype), b* : [out, 1] f32
    # wd/bd : folded 2-class head (w4[0]-w4[1] : [1, H], b4[0]-b4[1] : [1, 1])
    # o_ref : [2, Tb]   f32, lane-dense (batch on lanes)
    cdt = w1_ref.dtype
    x = x_ref[...]                                                  # [Tb, D]

    # Layer 1: contract D on both operands -> [H, Tb].  The batch moves onto
    # the lane axis here (on-MXU relayout of the already-resident tile), so no
    # HBM-side transpose of x is ever needed.
    h = jax.lax.dot_general(w1_ref[...], x,
                            dimension_numbers=(((1,), (1,)), ((), ())),
                            preferred_element_type=jnp.float32)     # [H, Tb]
    h = jnp.maximum(h + b1_ref[...], 0.0)

    h = jnp.dot(w2_ref[...], h.astype(cdt),
                preferred_element_type=jnp.float32)                 # [H, Tb]
    h = jnp.maximum(h + b2_ref[...], 0.0)

    h = jnp.dot(w3_ref[...], h.astype(cdt),
                preferred_element_type=jnp.float32)                 # [H, Tb]
    h = jnp.maximum(h + b3_ref[...], 0.0)

    # Folded head: z_diff = z0 - z1 from one 1-row matmul; the 2-class softmax
    # is sigmoid of the logit difference (stable: exp -> inf gives p1=0, p0=1).
    zd = jnp.dot(wd_ref[...], h.astype(cdt),
                 preferred_element_type=jnp.float32) + bd_ref[...]  # [1, Tb]
    p1 = 1.0 / (1.0 + jnp.exp(zd))          # == softmax(z)[..., 1], f32 chain
    p0 = 1.0 - p1

    # Lane-dense stores, only sublane-sliced.
    o_ref[0:1, :] = p0.astype(o_ref.dtype)
    o_ref[1:2, :] = p1.astype(o_ref.dtype)


def gate_multirules(x, params, *, tile_b=16384, compute_dtype=jnp.bfloat16):
    """Forward pass of Gate_multirules (non-linear net, hard=False).

    x: [B, input_dim]. params: w*: [out, in] (PyTorch layout), b*: [out, 1].
    Returns [B, 2] softmax probabilities (float32).
    """
    B, D = x.shape
    H = params["w2"].shape[0]
    O = params["w4"].shape[0]

    in_bytes = jnp.dtype(compute_dtype).itemsize

    # ---- batch-tile selection --------------------------------------------
    # VMEM footprint per batch element (lane/sublane padded, double-buffered
    # x & out tiles + live f32 intermediates); budget ~24 MiB so the working
    # set fits v7x's 64 MiB part and v5e once vmem_limit_bytes is raised.
    per_elem = (2 * _round_up(D, 128) * in_bytes        # x tile, double-buffered
                + 2 * _round_up(O, 8) * 4               # out tile, double-buffered
                + 6 * _round_up(H, 8) * 4)              # live f32 intermediates
    budget = 24 << 20
    vmem_cap = max(128, (budget // per_elem) // 128 * 128)

    if B >= 256:
        # Multiple of 128 lanes, capped so there are always >=2 grid steps
        # (both v7x TensorCores busy) and the VMEM budget holds.
        tile_b = _round_up(max(tile_b, 128), 128)
        tile_b = min(tile_b, vmem_cap, _round_up((B + 1) // 2, 128))
        tile_b = max(tile_b, 128)
    else:
        # Tiny batch: one full-array block (lane density is moot at this size).
        tile_b = B

    num_steps = pl.cdiv(B, tile_b)

    # ---- operand prep ------------------------------------------------------
    # x is NOT padded or transposed (no extra HBM pass).  The optional dtype
    # cast halves the kernel's HBM read; under jit of a larger model it fuses
    # into x's producer (feed x pre-cast, or compute_dtype=f32, to avoid it).
    if x.dtype != compute_dtype:
        x = x.astype(compute_dtype)

    w1 = params["w1"].astype(compute_dtype)
    w2 = params["w2"].astype(compute_dtype)
    w3 = params["w3"].astype(compute_dtype)
    b1 = params["b1"].astype(jnp.float32)
    b2 = params["b2"].astype(jnp.float32)
    b3 = params["b3"].astype(jnp.float32)
    w4 = params["w4"].astype(jnp.float32)
    b4 = params["b4"].astype(jnp.float32)
    wd = (w4[0:1, :] - w4[1:2, :]).astype(compute_dtype)   # [1, H]
    bd = (b4[0:1, :] - b4[1:2, :])                          # [1, 1], f32

    def full(arr):
        # Whole (tiny) weight/bias every step; constant block index => Pallas
        # keeps it resident and skips the re-DMA across grid steps.
        return pl.BlockSpec(arr.shape, lambda i: (0,) * arr.ndim)

    vmem_estimate = per_elem * tile_b + (1 << 20)          # + params & slack
    vmem_limit = int(min(40 << 20, max(vmem_estimate + (4 << 20), 16 << 20)))

    out = pl.pallas_call(
        gate_multirules_kernel,
        out_shape=jax.ShapeDtypeStruct((O, B), jnp.float32),
        grid_spec=pltpu.PrefetchScalarGridSpec(
            num_scalar_prefetch=0,
            grid=(num_steps,),
            in_specs=[
                pl.BlockSpec((tile_b, D), lambda i: (i, 0)),   # native x blocks
                full(w1), full(b1),
                full(w2), full(b2),
                full(w3), full(b3),
                full(wd), full(bd),
            ],
            out_specs=pl.BlockSpec((O, tile_b), lambda i: (0, i)),  # lane-dense
        ),
        compiler_params=pltpu.CompilerParams(
            dimension_semantics=("parallel",),      # megacore sharding on v7x
            vmem_limit_bytes=vmem_limit),
    )(x, w1, b1, w2, b2, w3, b3, wd, bd)

    return out.T                                            # [B, 2]


def init_params(key, input_dim, hidden_dim, output_dim=2):
    """nn.Linear-style init (uniform +/- 1/sqrt(fan_in)), PyTorch layout:
    weights [out, in], biases [out, 1]."""
    dims = [(input_dim, hidden_dim),
            (hidden_dim, hidden_dim),
            (hidden_dim, hidden_dim),
            (hidden_dim, output_dim)]
    params = {}
    for idx, (fan_in, fan_out) in enumerate(dims, start=1):
        key, kw, kb = jax.random.split(key, 3)
        bound = 1.0 / (fan_in ** 0.5)
        params[f"w{idx}"] = jax.random.uniform(
            kw, (fan_out, fan_in), jnp.float32, -bound, bound)
        params[f"b{idx}"] = jax.random.uniform(
            kb, (fan_out, 1), jnp.float32, -bound, bound)
    return params


def gate_multirules_ref(x, params):
    h = jnp.maximum(x @ params["w1"].T + params["b1"][:, 0], 0.0)
    h = jnp.maximum(h @ params["w2"].T + params["b2"][:, 0], 0.0)
    h = jnp.maximum(h @ params["w3"].T + params["b3"][:, 0], 0.0)
    z = h @ params["w4"].T + params["b4"][:, 0]
    return jax.nn.softmax(z, axis=-1)


if __name__ == "__main__":
    key = jax.random.PRNGKey(0)
    kx, kp, kx2, kx3 = jax.random.split(key, 4)

    input_dim, hidden_dim, output_dim = 32, 8, 2
    params = init_params(kp, input_dim, hidden_dim, output_dim)

    # 1) Default (bf16 compute) path, small batch.
    x = jax.random.normal(kx, (16, input_dim), dtype=jnp.float32)
    out = jax.block_until_ready(gate_multirules(x, params))
    ref = gate_multirules_ref(x, params)
    assert out.shape == (16, output_dim)
    assert jnp.allclose(out, ref, atol=2e-2), float(jnp.max(jnp.abs(out - ref)))
    assert jnp.allclose(jnp.sum(out, axis=-1), 1.0, atol=1e-5)

    # 2) Exact f32-parity path.
    out32 = jax.block_until_ready(
        gate_multirules(x, params, compute_dtype=jnp.float32))
    assert jnp.allclose(out32, ref, atol=1e-5, rtol=1e-5)

    # 3) Ragged tiny batch: no padding, no divisibility requirement.
    x2 = jax.random.normal(kx2, (5, input_dim), dtype=jnp.float32)
    out2 = jax.block_until_ready(
        gate_multirules(x2, params, compute_dtype=jnp.float32))
    ref2 = gate_multirules_ref(x2, params)
    assert out2.shape == (5, output_dim)
    assert jnp.allclose(out2, ref2, atol=1e-5, rtol=1e-5)

    # 4) Multi-step grid with a partial trailing block (cdiv path, >=2 steps).
    x3 = jax.random.normal(kx3, (300, input_dim), dtype=jnp.float32)
    out3 = jax.block_until_ready(
        gate_multirules(x3, params, compute_dtype=jnp.float32))
    ref3 = gate_multirules_ref(x3, params)
    assert out3.shape == (300, output_dim)
    assert jnp.allclose(out3, ref3, atol=1e-5, rtol=1e-5)

    print("KERNEL_OK")
</pallas_src>

<mosaic_0001>
module attributes {stable_mosaic.version = 11 : i64} {
  func.func @gate_multirules_kernel(%arg0: i32, %arg1: memref<16x32xbf16, #tpu.memory_space<vmem>>, %arg2: memref<8x32xbf16, #tpu.memory_space<vmem>>, %arg3: memref<8x1xf32, #tpu.memory_space<vmem>>, %arg4: memref<8x8xbf16, #tpu.memory_space<vmem>>, %arg5: memref<8x1xf32, #tpu.memory_space<vmem>>, %arg6: memref<8x8xbf16, #tpu.memory_space<vmem>>, %arg7: memref<8x1xf32, #tpu.memory_space<vmem>>, %arg8: memref<1x8xbf16, #tpu.memory_space<vmem>>, %arg9: memref<1x1xf32, #tpu.memory_space<vmem>>, %arg10: memref<2x16xf32, #tpu.memory_space<vmem>>) attributes {dimension_semantics = [#tpu.dimension_semantics<parallel>], iteration_bounds = array<i64: 1>, scalar_prefetch = 0 : i64, scratch_operands = 0 : i64, tpu.core_type = #tpu.core_type<tc>, window_params = [{transform_indices = @transform_0, window_bounds = array<i64: 16, 32>}, {pipeline_mode = #tpu.pipeline_mode<synchronous>, transform_indices = @transform_1, window_bounds = array<i64: 8, 32>}, {pipeline_mode = #tpu.pipeline_mode<synchronous>, transform_indices = @transform_2, window_bounds = array<i64: 8, 1>}, {pipeline_mode = #tpu.pipeline_mode<synchronous>, transform_indices = @transform_3, window_bounds = array<i64: 8, 8>}, {pipeline_mode = #tpu.pipeline_mode<synchronous>, transform_indices = @transform_4, window_bounds = array<i64: 8, 1>}, {pipeline_mode = #tpu.pipeline_mode<synchronous>, transform_indices = @transform_5, window_bounds = array<i64: 8, 8>}, {pipeline_mode = #tpu.pipeline_mode<synchronous>, transform_indices = @transform_6, window_bounds = array<i64: 8, 1>}, {pipeline_mode = #tpu.pipeline_mode<synchronous>, transform_indices = @transform_7, window_bounds = array<i64: 1, 8>}, {pipeline_mode = #tpu.pipeline_mode<synchronous>, transform_indices = @transform_8, window_bounds = array<i64: 1, 1>}, {transform_indices = @transform_9, window_bounds = array<i64: 2, 16>}]} {
    %c0 = arith.constant 0 : index
    %c0_0 = arith.constant 0 : index
    %0 = vector.load %arg1[%c0, %c0_0] : memref<16x32xbf16, #tpu.memory_space<vmem>>, vector<16x32xbf16>
    %c0_1 = arith.constant 0 : index
    %c0_2 = arith.constant 0 : index
    %1 = vector.load %arg2[%c0_1, %c0_2] : memref<8x32xbf16, #tpu.memory_space<vmem>>, vector<8x32xbf16>
    %cst = arith.constant dense<0.000000e+00> : vector<8x16xf32>
    %2 = tpu.matmul %1, %0, %cst {dimension_numbers = #tpu.dot_dimension_numbers<[1], [1], [0], [0], [0, 0, 1, 0], [], []>} : vector<8x32xbf16>, vector<16x32xbf16>, vector<8x16xf32> -> vector<8x16xf32>
    %c0_3 = arith.constant 0 : index
    %c0_4 = arith.constant 0 : index
    %3 = vector.load %arg3[%c0_3, %c0_4] : memref<8x1xf32, #tpu.memory_space<vmem>>, vector<8x1xf32>
    %4 = vector.broadcast %3 : vector<8x1xf32> to vector<8x16xf32>
    %5 = arith.addf %2, %4 : vector<8x16xf32>
    %cst_5 = arith.constant 0.000000e+00 : f32
    %6 = vector.broadcast %cst_5 : f32 to vector<8x16xf32>
    %7 = arith.maximumf %5, %6 : vector<8x16xf32>
    %c0_6 = arith.constant 0 : index
    %c0_7 = arith.constant 0 : index
    %8 = vector.load %arg4[%c0_6, %c0_7] : memref<8x8xbf16, #tpu.memory_space<vmem>>, vector<8x8xbf16>
    %9 = arith.truncf %7 : vector<8x16xf32> to vector<8x16xbf16>
    %cst_8 = arith.constant dense<0.000000e+00> : vector<8x16xf32>
    %10 = tpu.matmul %8, %9, %cst_8 {dimension_numbers = #tpu.dot_dimension_numbers<[1], [0], [0], [1], [0, 0, 1, 1], [], []>} : vector<8x8xbf16>, vector<8x16xbf16>, vector<8x16xf32> -> vector<8x16xf32>
    %c0_9 = arith.constant 0 : index
    %c0_10 = arith.constant 0 : index
    %11 = vector.load %arg5[%c0_9, %c0_10] : memref<8x1xf32, #tpu.memory_space<vmem>>, vector<8x1xf32>
    %12 = vector.broadcast %11 : vector<8x1xf32> to vector<8x16xf32>
    %13 = arith.addf %10, %12 : vector<8x16xf32>
    %cst_11 = arith.constant 0.000000e+00 : f32
    %14 = vector.broadcast %cst_11 : f32 to vector<8x16xf32>
    %15 = arith.maximumf %13, %14 : vector<8x16xf32>
    %c0_12 = arith.constant 0 : index
    %c0_13 = arith.constant 0 : index
    %16 = vector.load %arg6[%c0_12, %c0_13] : memref<8x8xbf16, #tpu.memory_space<vmem>>, vector<8x8xbf16>
    %17 = arith.truncf %15 : vector<8x16xf32> to vector<8x16xbf16>
    %cst_14 = arith.constant dense<0.000000e+00> : vector<8x16xf32>
    %18 = tpu.matmul %16, %17, %cst_14 {dimension_numbers = #tpu.dot_dimension_numbers<[1], [0], [0], [1], [0, 0, 1, 1], [], []>} : vector<8x8xbf16>, vector<8x16xbf16>, vector<8x16xf32> -> vector<8x16xf32>
    %c0_15 = arith.constant 0 : index
    %c0_16 = arith.constant 0 : index
    %19 = vector.load %arg7[%c0_15, %c0_16] : memref<8x1xf32, #tpu.memory_space<vmem>>, vector<8x1xf32>
    %20 = vector.broadcast %19 : vector<8x1xf32> to vector<8x16xf32>
    %21 = arith.addf %18, %20 : vector<8x16xf32>
    %cst_17 = arith.constant 0.000000e+00 : f32
    %22 = vector.broadcast %cst_17 : f32 to vector<8x16xf32>
    %23 = arith.maximumf %21, %22 : vector<8x16xf32>
    %c0_18 = arith.constant 0 : index
    %c0_19 = arith.constant 0 : index
    %24 = vector.load %arg8[%c0_18, %c0_19] : memref<1x8xbf16, #tpu.memory_space<vmem>>, vector<1x8xbf16>
    %25 = arith.truncf %23 : vector<8x16xf32> to vector<8x16xbf16>
    %cst_20 = arith.constant dense<0.000000e+00> : vector<1x16xf32>
    %26 = tpu.matmul %24, %25, %cst_20 {dimension_numbers = #tpu.dot_dimension_numbers<[1], [0], [0], [1], [0, 0, 1, 1], [], []>} : vector<1x8xbf16>, vector<8x16xbf16>, vector<1x16xf32> -> vector<1x16xf32>
    %c0_21 = arith.constant 0 : index
    %c0_22 = arith.constant 0 : index
    %27 = vector.load %arg9[%c0_21, %c0_22] : memref<1x1xf32, #tpu.memory_space<vmem>>, vector<1x1xf32>
    %28 = vector.broadcast %27 : vector<1x1xf32> to vector<1x16xf32>
    %29 = arith.addf %26, %28 : vector<1x16xf32>
    %30 = math.exp %29 : vector<1x16xf32>
    %cst_23 = arith.constant 1.000000e+00 : f32
    %31 = vector.broadcast %cst_23 : f32 to vector<1x16xf32>
    %32 = arith.addf %31, %30 : vector<1x16xf32>
    %cst_24 = arith.constant 1.000000e+00 : f32
    %33 = vector.broadcast %cst_24 : f32 to vector<1x16xf32>
    %34 = arith.divf %33, %32 : vector<1x16xf32>
    %cst_25 = arith.constant 1.000000e+00 : f32
    %35 = vector.broadcast %cst_25 : f32 to vector<1x16xf32>
    %36 = arith.subf %35, %34 : vector<1x16xf32>
    %c0_26 = arith.constant 0 : index
    %c0_27 = arith.constant 0 : index
    %37 = vector.load %arg10[%c0_26, %c0_27] : memref<2x16xf32, #tpu.memory_space<vmem>>, vector<1x16xf32>
    tpu.vector_store %arg10[%c0_26, %c0_27], %36 {strides = array<i32>} : memref<2x16xf32, #tpu.memory_space<vmem>>, vector<1x16xf32>,
    %c1 = arith.constant 1 : index
    %c0_28 = arith.constant 0 : index
    %38 = vector.load %arg10[%c1, %c0_28] : memref<2x16xf32, #tpu.memory_space<vmem>>, vector<1x16xf32>
    tpu.vector_store %arg10[%c1, %c0_28], %34 {strides = array<i32>} : memref<2x16xf32, #tpu.memory_space<vmem>>, vector<1x16xf32>,
    return
  }
  func.func @transform_0(%arg0: i32) -> (i32, i32) {
    %c0_i32 = arith.constant 0 : i32
    %c0_i32_0 = arith.constant 0 : i32
    return %arg0, %c0_i32 : i32, i32
  }
  func.func @transform_1(%arg0: i32) -> (i32, i32) {
    %c0_i32 = arith.constant 0 : i32
    %c0_i32_0 = arith.constant 0 : i32
    %c0_i32_1 = arith.constant 0 : i32
    return %c0_i32, %c0_i32_0 : i32, i32
  }
  func.func @transform_2(%arg0: i32) -> (i32, i32) {
    %c0_i32 = arith.constant 0 : i32
    %c0_i32_0 = arith.constant 0 : i32
    %c0_i32_1 = arith.constant 0 : i32
    return %c0_i32, %c0_i32_0 : i32, i32
  }
  func.func @transform_3(%arg0: i32) -> (i32, i32) {
    %c0_i32 = arith.constant 0 : i32
    %c0_i32_0 = arith.constant 0 : i32
    %c0_i32_1 = arith.constant 0 : i32
    return %c0_i32, %c0_i32_0 : i32, i32
  }
  func.func @transform_4(%arg0: i32) -> (i32, i32) {
    %c0_i32 = arith.constant 0 : i32
    %c0_i32_0 = arith.constant 0 : i32
    %c0_i32_1 = arith.constant 0 : i32
    return %c0_i32, %c0_i32_0 : i32, i32
  }
  func.func @transform_5(%arg0: i32) -> (i32, i32) {
    %c0_i32 = arith.constant 0 : i32
    %c0_i32_0 = arith.constant 0 : i32
    %c0_i32_1 = arith.constant 0 : i32
    return %c0_i32, %c0_i32_0 : i32, i32
  }
  func.func @transform_6(%arg0: i32) -> (i32, i32) {
    %c0_i32 = arith.constant 0 : i32
    %c0_i32_0 = arith.constant 0 : i32
    %c0_i32_1 = arith.constant 0 : i32
    return %c0_i32, %c0_i32_0 : i32, i32
  }
  func.func @transform_7(%arg0: i32) -> (i32, i32) {
    %c0_i32 = arith.constant 0 : i32
    %c0_i32_0 = arith.constant 0 : i32
    %c0_i32_1 = arith.constant 0 : i32
    return %c0_i32, %c0_i32_0 : i32, i32
  }
  func.func @transform_8(%arg0: i32) -> (i32, i32) {
    %c0_i32 = arith.constant 0 : i32
    %c0_i32_0 = arith.constant 0 : i32
    %c0_i32_1 = arith.constant 0 : i32
    return %c0_i32, %c0_i32_0 : i32, i32
  }
  func.func @transform_9(%arg0: i32) -> (i32, i32) {
    %c0_i32 = arith.constant 0 : i32
    %c0_i32_0 = arith.constant 0 : i32
    return %c0_i32, %arg0 : i32, i32
  }
}

</mosaic_0001>

<bundles_post_ra>
// kernel: tpu_custom_call.1
= control target key start
LH: loop header
LB: loop body
LE: loop exit
PB: predicated region body
PF: predicated region fallthrough
CT: control target
= control target key end

     0   :  { %s468_s0 = inlined_call_operand.vmem [shape: bf16[16,32], index: 0, kind: input, shape index: {}]   ;;  %s469_s1 = inlined_call_operand.vmem [shape: bf16[8,32], index: 1, kind: input, shape index: {}]   ;;  %s470_s2 = inlined_call_operand.vmem [shape: f32[8,1], index: 2, kind: input, shape index: {}]   ;;  %s471_s3 = inlined_call_operand.vmem [shape: bf16[8,8], index: 3, kind: input, shape index: {}]   ;;  %s472_s4 = inlined_call_operand.vmem [shape: f32[8,1], index: 4, kind: input, shape index: {}]   ;;  %s473_s5 = inlined_call_operand.vmem [shape: bf16[8,8], index: 5, kind: input, shape index: {}]   ;;  %s474_s6 = inlined_call_operand.vmem [shape: f32[8,1], index: 6, kind: input, shape index: {}]   ;;  %s475_s7 = inlined_call_operand.vmem [shape: bf16[1,8], index: 7, kind: input, shape index: {}]   ;;  %s476_s8 = inlined_call_operand.<no memory space> [shape: f32[1,1], index: 8, kind: input, shape index: {}]   ;;  %s477_s9 = inlined_call_operand.hbm [shape: f32[2,16], index: 9, kind: output, shape index: {}]  }
   0x1   :  { %v14_v0 = vstv %s476_s8 }
   0x2   :  { %15 = vst [vmem:[#allocation2] sm:$0x1] %v14_v0 }
   0x3   :  { %v334_v1 = vld [vmem:[%s468_s0] sm:$0xff]   ;;  %v363_v2 = vmov 0.0   ;;  %vm50_vm0 = vcmask 261120   ;;  %vm364_vm1 = vmmov 0   ;;  %v365_v5 = vmov 0  }
   0x4   :  { %304 = vmatprep.subr.bf16.mxu0 %v363_v2  ;;  %v39_v3 = vld [vmem:[%s470_s2] sm:$0xff]  ;;  %310 = vmatprep.subr.bf16.mxu1 %v363_v2  ;;  %v55_v4 = vsel %vm50_vm0, %v334_v1, 0 }
   0x5   :  { %306 = vmatprep.mubr.msk.bf16.mxu0 %vm364_vm1, %v363_v2  ;;  %332 = vset.pattern.permute.xlu0 %v365_v5 }
   0x6   :  { %16 = vsyncpa [#allocation4], 0  ;;  %305 = vmatpush3.bf16.xpose.msra.mxu0 %v55_v4  ;;  %42 = vperm.xlu0 %332, %v39_v3   ;;  %v100_v6 = vld [vmem:[%s472_s4] sm:$0xff]  ;;  %vm110_vm2 = vcmask 1043456   ;;  %vm106_vm3 = vcmask 64512   ;;  %v218_v40 = vlaneseq  ;;  %vm274_vm4 = vcmask 122880  }
   0x7   :  { %312 = vmatprep.mubr.msk.bf16.mxu1 %vm364_vm1, %v363_v2  ;;  %333 = vset.pattern.permute.xlu1 %v365_v5  ;;  %v38_v7 = vld [vmem:[%s469_s1] sm:$0xf] }
   0x8   :  { %322 = vmatprep.subr.bf16.mxu0 %v363_v2  ;;  %v98_v17 = vld [vmem:[%s471_s3] sm:$0xf]  ;;  %v219_v41 = vshrl.u32 %v218_v40, 7 }
   0x9   :  { %v157_v18 = vld [vmem:[%s474_s6] sm:$0xff] }
   0xa   :  { %103 = vperm.xlu0 %332, %v100_v6   ;;  %160 = vperm.xlu1 %333, %v157_v18   ;;  %v212_v19 = vld [vmem:[#allocation2] sm:$0x1]  ;;  %v220_v42 = vsub.s32 0, %v219_v41 }
   0xb   :  { %v155_v29 = vld [vmem:[%s473_s5] sm:$0xf]  ;;  %s366_s5 = smov [#allocation3]  }
   0xc   :  { %v210_v39 = vld [vmem:[%s475_s7] sm:$0x1]  ;;  %s283_s7 = sshll.u32 %s366_s5, 4  ;;  %s284_s7 = int_to_ptr.vmem [resolvable:$true] %s283_s7 }
   0xd   :  { %307 = vmatmul.mubr.msk.bf16.vlgmr.msra.gmra.mrb[0].mxu0 %vm50_vm0, %v38_v7  ;;  %s339_s20 = scalar_lea.vmem %s284_s7, 32  ;;  %p344_p1 = scmp.lt.s32.totalorder %s284_s7, %s284_s7 }
   0xe   :  { %324 = vmatprep.mubr.msk.bf16.mxu0 %vm364_vm1, %v363_v2  ;;  %215 = vperm.xlu1 %333, %v212_v19   ;;  %p340_p0 = scmp.ne.s32.totalorder %s284_s7, %s339_s20  ;;  %p345_p2 = scmp.lt.s32.totalorder %s339_s20, %s339_s20 }
  0x10   :  { %p346_p3 = por %p345_p2, %p344_p1 }
  0x12   :  { %p347_p4 = pnand %p346_p3, %p340_p0 }
  0x85   :  { %v43_v8 = vpop.permute.xlu0 %42 }
  0x89   :  { %v104_v20 = vpop.permute.xlu0 %103  ;;  %v161_v30 = vpop.permute.xlu1 %160 }
  0x8d   :  { %v216_v43 = vpop.permute.xlu1 %215 }
  0x8e   :  { %v221_v44 = vrot.slane %v216_v43, %v220_v42 }
  0xe0   :  { %v91_v9 = vpop.f32.mrb[0].mxu0 }
  0xe1   :  { %v92_v10 = vadd.f32 %v91_v9, %v43_v8  ;;  %v308_v11 = vpop.f32.mrb[1].mxu0 }
  0xe2   :  { %v94_v12 = vpop.f32.mrb[2].mxu0 }
  0xe3   :  { %v97_v13 = vmax.f32 %v92_v10, 0.0  ;;  %v309_v14 = vpop.f32.mrb[3].mxu0 }
  0xe5   :  { %v99_v15 = vpack.c.bf16 %v97_v13, %v97_v13 }
  0xe7   :  { %v112_v16 = vsel %vm110_vm2, %v99_v15, 0 }
  0xe8   :  { %311 = vmatpush3.bf16.msra.mxu1 %v112_v16 }
  0xe9   :  { %316 = vmatprep.subr.bf16.mxu1 %v363_v2 }
  0xeb   :  { %313 = vmatmul.mubr.msk.bf16.vlgmr.msra.gmra.mrb[0].mxu1 %vm106_vm3, %v98_v17 }
  0xec   :  { %318 = vmatprep.mubr.msk.bf16.mxu1 %vm364_vm1, %v363_v2 }
 0x1be   :  { %v148_v21 = vpop.f32.mrb[0].mxu1 }
 0x1bf   :  { %v149_v22 = vadd.f32 %v148_v21, %v104_v20  ;;  %v314_v23 = vpop.f32.mrb[1].mxu1 }
 0x1c0   :  { %v151_v24 = vpop.f32.mrb[2].mxu1 }
 0x1c1   :  { %v154_v25 = vmax.f32 %v149_v22, 0.0  ;;  %v315_v26 = vpop.f32.mrb[3].mxu1 }
 0x1c3   :  { %v156_v27 = vpack.c.bf16 %v154_v25, %v154_v25 }
 0x1c5   :  { %v167_v28 = vsel %vm110_vm2, %v156_v27, 0 }
 0x1c6   :  { %317 = vmatpush3.bf16.msra.mxu1 %v167_v28 }
 0x1c9   :  { %319 = vmatmul.mubr.msk.bf16.vlgmr.msra.gmra.mrb[4].mxu1 %vm106_vm3, %v155_v29 }
 0x29c   :  { %v203_v31 = vpop.f32.mrb[4].mxu1 }
 0x29d   :  { %v204_v32 = vadd.f32 %v203_v31, %v161_v30  ;;  %v320_v33 = vpop.f32.mrb[5].mxu1 }
 0x29e   :  { %v206_v34 = vpop.f32.mrb[6].mxu1 }
 0x29f   :  { %v209_v35 = vmax.f32 %v204_v32, 0.0  ;;  %v321_v36 = vpop.f32.mrb[7].mxu1 }
 0x2a1   :  { %v211_v37 = vpack.c.bf16 %v209_v35, %v209_v35 }
 0x2a3   :  { %v226_v38 = vsel %vm110_vm2, %v211_v37, 0 }
 0x2a4   :  { %323 = vmatpush3.bf16.msra.mxu0 %v226_v38 }
 0x2a7   :  { %325 = vmatmul.mubr.msk.bf16.vlgmr.msra.gmra.mrb[4].mxu0 %vm106_vm3, %v210_v39 }
 0x37a   :  { %v262_v45 = vpop.f32.mrb[4].mxu0 }
 0x37b   :  { %v263_v46 = vadd.f32 %v262_v45, %v221_v44  ;;  %v326_v47 = vpop.f32.mrb[5].mxu0 }
 0x37c   :  { %v265_v48 = vpop.f32.mrb[6].mxu0 }
 0x37d   :  { %v268_v49 = vmul.f32 1.442695, %v263_v46  ;;  %v327_v50 = vpop.f32.mrb[7].mxu0 }
 0x37f   :  { %335 = vpow2.f32 %v268_v49 }
 0x389   :  { %v336_v51 = vpop.eup %335 }
 0x38a   :  { %v270_v52 = vadd.f32 1.0, %v336_v51 }
 0x38c   :  { %337 = vrcp.f32 %v270_v52 }
 0x396   :  { %v338_v53 = vpop.eup %337 }
 0x397   :  { %v273_v54 = vsub.f32 1.0, %v338_v53  ;;  %276 = vst.msk [vmem:[#allocation3 + $0x1] sm:$0x1] %vm274_vm4, %v338_v53 }
 0x399   :  { %275 = vst.msk [vmem:[#allocation3] sm:$0x1] %vm274_vm4, %v273_v54 }
 0x39a   :  { %350 = shalt.err (!%p347_p4)
}
 0x39b   :  { %s351_s23 = scalar_lea.hbm %s477_s9, 32 }
 0x39c   :  { %p352_p5 = scmp.ne.s32.totalorder %s477_s9, %s351_s23  ;;  %p355_p6 = scmp.lt.u32.totalorder %s351_s23, %s477_s9 }
 0x39e   :  { %p357_p7 = pnand %p355_p6, %p352_p5 }
 0x3a0   :  { %360 = shalt.err (!%p357_p7)
}
 0x3a1   :  { %286 = dma.vmem_to_hbm [thread:$0]  %s284_s7, 32, %s477_s9, [#allocation4]  }
 0x3a2   :  { %361 = dma.done.wait [#allocation4], 32  }
 0x3a3   :  { %362 = vsyncadd [#allocation4], 4294967264 }
 0x3a4   :  { %290 = vsyncpa [#allocation4], 1 }

</bundles_post_ra>
